<compile_context>
chip_gen: v6e
topology: v6e:2x2x1
jax: 0.10.0
libtpu: 0.0.40
codegen_flags: <defaults>
</compile_context>

<pallas_src>
import math
import functools

import jax
import jax.numpy as jnp
from jax.experimental import pallas as pl
from jax.experimental.pallas import tpu as pltpu


# --------------------------------------------------------------------------- #
# Kernels
# --------------------------------------------------------------------------- #
def _pe_add_kernel(x_ref, pe_ref, o_ref):
    """x_ref: (TS, B, D), pe_ref: (TS, 1, D) -> o_ref: (TS, B, D).

    pe broadcasts over the batch axis in-register; the add stays in x's dtype
    (bf16 VPU on v6e/v7x, half-width HBM read for bf16 inputs).
    """
    o_ref[...] = (x_ref[...] + pe_ref[...]).astype(o_ref.dtype)


def _pe_dropout_prng_kernel(seed_ref, x_ref, pe_ref, o_ref, *, p_drop):
    """Add + inverted dropout using the TPU hardware PRNG (TPU backend only)."""
    y = x_ref[...] + pe_ref[...]                      # x's dtype

    # Hash the grid step into the seed (multi-arg prng_seed hashes its inputs).
    # Additive mixing (seed + program_id) would make training step s+1, tile i
    # replay step s, tile i+1's stream when seeds increment by 1.
    pltpu.prng_seed(seed_ref[0], pl.program_id(0))
    bits = pltpu.prng_random_bits(y.shape)
    if bits.dtype != jnp.uint32:
        bits = pltpu.bitcast(bits, jnp.uint32)

    # Integer threshold compare: P(bits < thr) == p_drop.  No shift, no
    # int->float convert, no extra multiply.
    thr = jnp.uint32(min(int(round(p_drop * 2.0**32)), 2**32 - 1))
    keep = bits >= thr

    # Scale in f32 before the final cast (free in this mem-bound kernel,
    # avoids the small systematic bias of a bf16-rounded 1/(1-p)).
    scale = jnp.float32(1.0 / (1.0 - p_drop))
    y = jnp.where(keep, y.astype(jnp.float32) * scale, jnp.float32(0.0))
    o_ref[...] = y.astype(o_ref.dtype)


def _pe_dropout_mask_kernel(x_ref, pe_ref, keep_ref, o_ref, *, p_drop):
    """Portable dropout path: keep-mask generated outside with jax.random."""
    y = x_ref[...] + pe_ref[...]
    scale = jnp.float32(1.0 / (1.0 - p_drop))
    y = jnp.where(keep_ref[...], y.astype(jnp.float32) * scale, jnp.float32(0.0))
    o_ref[...] = y.astype(o_ref.dtype)


# --------------------------------------------------------------------------- #
# Parameter setup (mirrors PositionalEncoding.__init__)
# --------------------------------------------------------------------------- #
def make_positional_encoding(d_model: int, max_len: int,
                             dtype=jnp.float32) -> jax.Array:
    """Build the `pe` buffer once, already in the model dtype (hoisted cast)."""
    position = jnp.arange(max_len, dtype=jnp.float32)[:, None]            # (L, 1)
    div_term = jnp.exp(
        jnp.arange(0, d_model, 2, dtype=jnp.float32) * (-math.log(10000.0) / d_model)
    )                                                                     # (D/2,)
    pe = jnp.zeros((max_len, 1, d_model), dtype=jnp.float32)
    pe = pe.at[:, 0, 0::2].set(jnp.sin(position * div_term))
    pe = pe.at[:, 0, 1::2].set(jnp.cos(position * div_term))
    return pe.astype(dtype)


# --------------------------------------------------------------------------- #
# Tiling heuristics
# --------------------------------------------------------------------------- #
def _choose_tile_rows(S, B, D, itemsize):
    """Sequence-tile size targeting ~4 MiB of x per grid step on all gens.

    Bigger tiles amortize the ~0.35 us per-step overhead (matters most on
    v7x's ~3.2 TB/s HBM).  The double-buffered x+out footprint (~16-17 MiB at
    4 MiB tiles) is made legal everywhere by an explicit vmem_limit_bytes.
    Also guarantees >= 2 (preferably an even number of) grid steps when the
    problem is big enough, so v7x's two TensorCores both get work through
    dimension_semantics=("parallel",).
    """
    row_bytes = max(1, B * D * itemsize)
    target = 4 * 1024 * 1024
    ts = max(1, target // row_bytes)
    if ts >= S:
        # Whole sequence fits in one tile; still split into 2 steps when the
        # problem is large enough that feeding two TensorCores is worth it.
        if S >= 2 and S * row_bytes >= 1 * 1024 * 1024:
            ts = pl.cdiv(S, 2)
        else:
            ts = S
    else:
        # Round to an even number of steps with a small remainder tile.
        n_steps = pl.cdiv(S, ts)
        if n_steps % 2:
            n_steps += 1
        ts = pl.cdiv(S, n_steps)
    return int(max(1, min(ts, S)))


def _vmem_limit_bytes(ts, B, D, itemsize, extra_per_row_bytes=0):
    # x tile + out tile + pe tile (+ optional mask), double-buffered, + slack.
    per_step = ts * ((2 * B * D + D) * itemsize + extra_per_row_bytes)
    return int(max(32 * 1024 * 1024, 2 * per_step + (2 << 20)))


# --------------------------------------------------------------------------- #
# Forward pass
# --------------------------------------------------------------------------- #
def positional_encoding_forward(x, pe, *, p_drop=0.1, training=False, seed=0,
                                tile_rows=None, use_tpu_prng=None):
    """out = dropout(x + pe[:S]) in one tiled, pipelined Pallas kernel.

    `pe` should be the full (max_len, 1, d_model) buffer, pre-cast to x.dtype
    at init (make_positional_encoding(..., dtype=...)); only the first
    ceil(S/ts) tiles are DMA'd.  For full lane/sublane density prefer
    d_model % 128 == 0 and batch >= 8 (true for the spec's d_model=256).
    """
    S, B, D = x.shape
    if pe.ndim != 3 or pe.shape[1] != 1 or pe.shape[2] != D or pe.shape[0] < S:
        raise ValueError(f"pe shape {pe.shape} incompatible with x shape {x.shape}")
    if pe.dtype != x.dtype:          # no-op when pre-cast at init (preferred path)
        pe = pe.astype(x.dtype)

    p_drop = float(p_drop)
    apply_dropout = bool(training) and p_drop > 0.0
    if apply_dropout and p_drop >= 1.0:
        return jnp.zeros_like(x)     # torch.nn.Dropout(p=1) semantics

    itemsize = jnp.dtype(x.dtype).itemsize
    if tile_rows is None:
        ts = _choose_tile_rows(S, B, D, itemsize)
    else:
        ts = max(1, min(int(tile_rows), S))
    grid = (pl.cdiv(S, ts),)

    out_shape = jax.ShapeDtypeStruct((S, B, D), x.dtype)
    x_spec = pl.BlockSpec((ts, B, D), lambda i: (i, 0, 0))
    pe_spec = pl.BlockSpec((ts, 1, D), lambda i: (i, 0, 0))
    o_spec = pl.BlockSpec((ts, B, D), lambda i: (i, 0, 0))

    if not apply_dropout:
        cparams = pltpu.CompilerParams(
            dimension_semantics=("parallel",),
            vmem_limit_bytes=_vmem_limit_bytes(ts, B, D, itemsize))
        cost = pl.CostEstimate(flops=S * B * D, transcendentals=0,
                               bytes_accessed=(2 * S * B * D + S * D) * itemsize)
        return pl.pallas_call(
            _pe_add_kernel, out_shape=out_shape, grid=grid,
            in_specs=[x_spec, pe_spec], out_specs=o_spec,
            compiler_params=cparams, cost_estimate=cost,
        )(x, pe)

    if use_tpu_prng is None:
        use_tpu_prng = (jax.default_backend() == "tpu")

    if use_tpu_prng:
        # Fast path: in-kernel hardware PRNG, seed prefetched into SMEM.
        seed_arr = jnp.asarray(seed, dtype=jnp.int32).reshape((1,))
        cparams = pltpu.CompilerParams(
            dimension_semantics=("parallel",),
            vmem_limit_bytes=_vmem_limit_bytes(ts, B, D, itemsize))
        cost = pl.CostEstimate(flops=3 * S * B * D, transcendentals=0,
                               bytes_accessed=(2 * S * B * D + S * D) * itemsize)
        kernel = functools.partial(_pe_dropout_prng_kernel, p_drop=p_drop)
        return pl.pallas_call(
            kernel, out_shape=out_shape,
            grid_spec=pltpu.PrefetchScalarGridSpec(
                num_scalar_prefetch=1, grid=grid,
                in_specs=[pl.BlockSpec((ts, B, D), lambda i, s: (i, 0, 0)),
                          pl.BlockSpec((ts, 1, D), lambda i, s: (i, 0, 0))],
                out_specs=pl.BlockSpec((ts, B, D), lambda i, s: (i, 0, 0))),
            compiler_params=cparams, cost_estimate=cost,
        )(seed_arr, x, pe)

    # Portable fallback (CPU / interpret mode): keep-mask generated outside.
    key = jax.random.PRNGKey(int(seed))
    keep = jax.random.bernoulli(key, 1.0 - p_drop, shape=(S, B, D))
    keep_spec = pl.BlockSpec((ts, B, D), lambda i: (i, 0, 0))
    cparams = pltpu.CompilerParams(
        dimension_semantics=("parallel",),
        vmem_limit_bytes=_vmem_limit_bytes(ts, B, D, itemsize, extra_per_row_bytes=B * D))
    cost = pl.CostEstimate(flops=3 * S * B * D, transcendentals=0,
                           bytes_accessed=(2 * S * B * D + S * D) * itemsize + S * B * D)
    kernel = functools.partial(_pe_dropout_mask_kernel, p_drop=p_drop)
    return pl.pallas_call(
        kernel, out_shape=out_shape, grid=grid,
        in_specs=[x_spec, pe_spec, keep_spec], out_specs=o_spec,
        compiler_params=cparams, cost_estimate=cost,
    )(x, pe, keep)


# --------------------------------------------------------------------------- #
# Self-test
# --------------------------------------------------------------------------- #
if __name__ == "__main__":
    # Small shapes consistent with the module: (seq, batch, d_model) with the
    # spec's d_model=256 (lane-dense) and batch=8 (sublane-dense).
    SEQ, BATCH, D_MODEL, MAX_LEN = 32, 8, 256, 64
    P_DROP = 0.1

    key = jax.random.PRNGKey(0)
    kx, k2 = jax.random.split(key)
    x = jax.random.normal(kx, (SEQ, BATCH, D_MODEL), dtype=jnp.float32)
    pe = make_positional_encoding(D_MODEL, MAX_LEN, dtype=x.dtype)

    # 1) Eval mode (dropout is identity): multi-step grid, vs pure-JAX reference.
    out_eval = positional_encoding_forward(x, pe, p_drop=P_DROP, training=False,
                                           tile_rows=8)
    out_eval = jax.block_until_ready(out_eval)
    ref = x + pe[:SEQ]
    assert out_eval.shape == x.shape
    assert jnp.allclose(out_eval, ref, atol=1e-6), "eval-mode mismatch"

    # 2) Eval mode with a partial last tile (S not a multiple of the tile).
    S2 = 37
    x2 = jax.random.normal(k2, (S2, BATCH, D_MODEL), dtype=jnp.float32)
    out2 = positional_encoding_forward(x2, pe, p_drop=P_DROP, training=False,
                                       tile_rows=16)
    out2 = jax.block_until_ready(out2)
    assert jnp.allclose(out2, x2 + pe[:S2], atol=1e-6), "partial-tile mismatch"

    # 3) Train mode: dropout active (hardware PRNG on TPU, jax.random fallback
    #    elsewhere). Surviving elements must equal ref / (1 - p); dropped are 0.
    out_train = positional_encoding_forward(x, pe, p_drop=P_DROP, training=True,
                                            seed=1234, tile_rows=8)
    out_train = jax.block_until_ready(out_train)
    assert out_train.shape == x.shape
    scale = 1.0 / (1.0 - P_DROP)
    consistent = jnp.logical_or(
        out_train == 0.0,
        jnp.isclose(out_train, ref * scale, rtol=1e-5, atol=1e-5),
    )
    assert bool(jnp.all(consistent)), "train-mode dropout values inconsistent"
    drop_frac = float(jnp.mean(out_train == 0.0))
    assert 0.0 < drop_frac < 0.3, f"unexpected drop fraction {drop_frac}"

    print("KERNEL_OK")
</pallas_src>

<mosaic_0001>
module attributes {stable_mosaic.version = 11 : i64} {
  func.func @_pe_add_kernel(%arg0: i32, %arg1: memref<8x8x256xf32, #tpu.memory_space<vmem>>, %arg2: memref<8x1x256xf32, #tpu.memory_space<vmem>>, %arg3: memref<8x8x256xf32, #tpu.memory_space<vmem>>) attributes {dimension_semantics = [#tpu.dimension_semantics<parallel>], iteration_bounds = array<i64: 4>, scalar_prefetch = 0 : i64, scratch_operands = 0 : i64, tpu.core_type = #tpu.core_type<tc>, window_params = [{transform_indices = @transform_0, window_bounds = array<i64: 8, 8, 256>}, {transform_indices = @transform_1, window_bounds = array<i64: 8, 1, 256>}, {transform_indices = @transform_2, window_bounds = array<i64: 8, 8, 256>}]} {
    %c0 = arith.constant 0 : index
    %c0_0 = arith.constant 0 : index
    %c0_1 = arith.constant 0 : index
    %0 = vector.load %arg1[%c0, %c0_0, %c0_1] : memref<8x8x256xf32, #tpu.memory_space<vmem>>, vector<8x8x256xf32>
    %c0_2 = arith.constant 0 : index
    %c0_3 = arith.constant 0 : index
    %c0_4 = arith.constant 0 : index
    %1 = vector.load %arg2[%c0_2, %c0_3, %c0_4] : memref<8x1x256xf32, #tpu.memory_space<vmem>>, vector<8x1x256xf32>
    %2 = vector.broadcast %1 : vector<8x1x256xf32> to vector<8x8x256xf32>
    %3 = arith.addf %0, %2 : vector<8x8x256xf32>
    %c0_5 = arith.constant 0 : index
    %c0_6 = arith.constant 0 : index
    %c0_7 = arith.constant 0 : index
    %4 = vector.load %arg3[%c0_5, %c0_6, %c0_7] : memref<8x8x256xf32, #tpu.memory_space<vmem>>, vector<8x8x256xf32>
    tpu.vector_store %arg3[%c0_5, %c0_6, %c0_7], %3 {strides = array<i32>} : memref<8x8x256xf32, #tpu.memory_space<vmem>>, vector<8x8x256xf32>,
    return
  }
  func.func @transform_0(%arg0: i32) -> (i32, i32, i32) {
    %c0_i32 = arith.constant 0 : i32
    %c0_i32_0 = arith.constant 0 : i32
    %c0_i32_1 = arith.constant 0 : i32
    return %arg0, %c0_i32, %c0_i32_0 : i32, i32, i32
  }
  func.func @transform_1(%arg0: i32) -> (i32, i32, i32) {
    %c0_i32 = arith.constant 0 : i32
    %c0_i32_0 = arith.constant 0 : i32
    %c0_i32_1 = arith.constant 0 : i32
    return %arg0, %c0_i32, %c0_i32_0 : i32, i32, i32
  }
  func.func @transform_2(%arg0: i32) -> (i32, i32, i32) {
    %c0_i32 = arith.constant 0 : i32
    %c0_i32_0 = arith.constant 0 : i32
    %c0_i32_1 = arith.constant 0 : i32
    return %arg0, %c0_i32, %c0_i32_0 : i32, i32, i32
  }
}

</mosaic_0001>

<bundles_post_ra>
// kernel: tpu_custom_call.1
= control target key start
LH: loop header
LB: loop body
LE: loop exit
PB: predicated region body
PF: predicated region fallthrough
CT: control target
= control target key end

     0   :  { %7 = vsyncpa [#allocation3], 0  ;;  %s974_s0 = inlined_call_operand.hbm [shape: f32[32,8,256], index: 0, kind: input, shape index: {}]   ;;  %s975_s1 = inlined_call_operand.hbm [shape: f32[64,1,256], index: 1, kind: input, shape index: {}]   ;;  %s976_s2 = inlined_call_operand.hbm [shape: f32[32,8,256], index: 2, kind: output, shape index: {}]  }
   0x1   :  { %9 = vsyncpa [#allocation3 + $0x1], 0 }
   0x2   :  { %10 = vsyncpa [#allocation6], 0 }
   0x3   :  { %12 = vsyncpa [#allocation6 + $0x1], 0 }
   0x4   :  { %13 = vsyncpa [#allocation4], 0 }
   0x5   :  { %15 = vsyncpa [#allocation4 + $0x1], 0  ;;  %s696_s9 = smov 0   ;;  %s698_s10 = smov 0  }
   0x6   :  { %s700_s11 = smov 0   ;;  %s702_s12 = smov 0  }
   0x7 LB: > { %s717_s13 = sadd.s32 4294967295, %s670_s12   ;;  %s462_s14 = sadd.s32 4294967294, %s670_s12   ;;  %s670_s12 = sphi %s702_s12, %s991_s12   ;;  %s666_s11 = sphi %s700_s11, %s990_s11   ;;  %s662_s10 = sphi %s698_s10, %s989_s10   ;;  %s658_s9 = sphi %s696_s9, %s988_s9  }
   0x8   : > { %s721_s15 = sadd.s32 1, %s670_s12   ;;  %s28_s16 = sadd.s32 1, %s666_s11 }
   0x9   : > { %s25_s17 = ssub.s32 %s670_s12, %s721_s15  ;;  %p35_p0 = scmp.ne.s32.totalorder %s666_s11, %s662_s10 }
   0xa   : > { %p26_p1 = scmp.eq.s32.totalorder %s25_s17, 0  ;;  %p36_p2 = scmp.eq.s32.totalorder %s670_s12, 0 }
   0xb   : > { %p41_p3 = scmp.ne.s32.totalorder %s662_s10, %s658_s9  ;;  %p42_p4 = scmp.eq.s32.totalorder %s717_s13, 0 }
   0xc   : > { %s733_s18 = scalar_select %p26_p1, %s666_s11, %s28_s16  }
   0xd   : > { %p735_p5 = por %p36_p2, %p35_p0  ;;  %p739_p6 = por %p42_p4, %p41_p3 }
   0xe   : > { %p91_p7 = scmp.eq.s32.totalorder %s717_s13, 3  ;;  %p97_p8 = scmp.eq.s32.totalorder %s462_s14, 3 }
   0xf   : > { %s980_s20 = scalar_select %p739_p6, 1, 0 }
  0x10   : > { %p506_p9 = scmp.lt.s32.totalorder %s670_s12, 4  ;;  %p745_p10 = por %p91_p7, %p35_p0 }
  0x11   : > { %p749_p11 = por %p97_p8, %p41_p3  ;;  %s754_s23 = sand.u32 1, %s666_s11  }
  0x12   : > { %s981_s21 = scalar_select %p745_p10, 1, 0 }
  0x13   : > { %s982_s22 = scalar_select %p749_p11, 1, 0 }
  0x14   : > { %s484_s24 = sshll.u32 %s670_s12, 11  ;;  %s465_s25 = sshll.u32 %s754_s23, 7 }
  0x15   : > { %s761_s28 = scalar_lea.hbm %s974_s0, %s484_s24  ;;  %s121_s29 = scalar_lea.vmem [#allocation2], %s465_s25 }
  0x16   : > { %s129_s30 = sshll.u32 %s121_s29, 4  ;;  %p765_p12 = pnand %p506_p9, %p735_p5  ;;  %s769_s30 = int_to_ptr.vmem [resolvable:$true] %s129_s30 }
  0x17   : > { %s118_s4 = scalar_lea.sflag [#allocation3], %s754_s23  ;;  %s546_s5 = scalar_lea.hbm %s761_s28, 2048 }
  0x18   : > { %p547_p13 = scmp.ne.s32.totalorder %s761_s28, %s546_s5  ;;  %p548_p0 = pneg %p765_p12 }
  0x19   : > { %s551_s8 = scalar_lea.hbm %s974_s0, 8192  ;;  %p552_p3 = scmp.lt.s32.totalorder %s761_s28, %s974_s0 }
  0x1a   : > { %p549_p1 = pnand %p548_p0, %p547_p13  ;;  %p553_p4 = scmp.lt.s32.totalorder %s551_s8, %s546_s5 }
  0x1c   : > { %p550_p2 = pneg %p549_p1  ;;  %p554_p5 = por %p553_p4, %p552_p3 }
  0x1e   : > { %p555_p7 = pnand %p554_p5, %p550_p2 }
  0x20   : > { %558 = shalt.err (!%p555_p7)
}
  0x21   : > { %s559_s17 = scalar_lea.vmem %s769_s30, 2048  ;;  %s672_s19 = smov [#allocation2]  }
  0x22   : > { %p560_p8 = scmp.ne.s32.totalorder %s769_s30, %s559_s17  ;;  %s564_s24 = sshll.u32 %s672_s19, 4  ;;  %s565_s24 = int_to_ptr.vmem [resolvable:$false] %s564_s24 }
  0x23   : > { %s566_s25 = scalar_lea.vmem %s565_s24, 4096  ;;  %p567_p1 = scmp.lt.s32.totalorder %s769_s30, %s565_s24 }
  0x24   : > { %p562_p9 = pnand %p560_p8, %p548_p0  ;;  %p568_p11 = scmp.lt.s32.totalorder %s566_s25, %s559_s17 }
  0x26   : > { %p563_p13 = pneg %p562_p9  ;;  %p569_p10 = por %p568_p11, %p567_p1 }
  0x28   : > { %p570_p3 = pnand %p569_p10, %p563_p13 }
  0x2a   : > { %573 = shalt.err (!%p570_p3)
}
  0x2b   : > { %s673_s26 = smov 256   ;;  %s674_s27 = smov 16  }
  0x2c   : > { %498 = dma.hbm_to_vmem [thread:$0]  (!%p765_p12), %s761_s28, 2048, %s769_s30, %s118_s4, %s673_s26, %s673_s26, %s674_s27  }
  0x2d   : > { %p473_p2 = scmp.ge.s32.totalorder %s670_s12, 1  ;;  %p159_p4 = scmp.lt.s32.totalorder %s670_s12, 5 }
  0x2e   : > { %s469_s29 = sshll.u32 %s754_s23, 4  ;;  %s486_s6 = sshll.u32 %s670_s12, 8 }
  0x2f   : > { %p801_p10 = pnand %p473_p2, %p159_p4  ;;  %s143_s7 = scalar_lea.vmem [#allocation5], %s469_s29 }
  0x30   : > { %s151_s8 = sshll.u32 %s143_s7, 4  ;;  %s809_s17 = scalar_lea.hbm %s975_s1, %s486_s6  ;;  %s811_s8 = int_to_ptr.vmem [resolvable:$true] %s151_s8 }
  0x31   : > { %s140_s28 = scalar_lea.sflag [#allocation6], %s754_s23  ;;  %s574_s30 = scalar_lea.hbm %s809_s17, 256 }
  0x32   : > { %p575_p11 = scmp.ne.s32.totalorder %s809_s17, %s574_s30  ;;  %s579_s24 = scalar_lea.hbm %s975_s1, 2048 }
  0x33   : > { %p580_p8 = scmp.lt.s32.totalorder %s809_s17, %s975_s1  ;;  %p581_p9 = scmp.lt.s32.totalorder %s579_s24, %s574_s30 }
  0x34   : > { %p577_p5 = pnand %p575_p11, %p548_p0 }
  0x35   : > { %p582_p13 = por %p581_p9, %p580_p8 }
  0x36   : > { %p578_p7 = pneg %p577_p5 }
  0x38   : > { %p583_p1 = pnand %p582_p13, %p578_p7 }
  0x3a   : > { %586 = shalt.err (!%p583_p1)
}
  0x3b   : > { %s587_s27 = scalar_lea.vmem %s811_s8, 256  ;;  %s675_s29 = smov [#allocation5]  }
  0x3c   : > { %p588_p3 = scmp.ne.s32.totalorder %s811_s8, %s587_s27  ;;  %s592_s6 = sshll.u32 %s675_s29, 4  ;;  %s593_s6 = int_to_ptr.vmem [resolvable:$false] %s592_s6 }
  0x3d   : > { %s594_s7 = scalar_lea.vmem %s593_s6, 512  ;;  %p595_p11 = scmp.lt.s32.totalorder %s811_s8, %s593_s6 }
  0x3e   : > { %p590_p2 = pnand %p588_p3, %p548_p0  ;;  %p596_p5 = scmp.lt.s32.totalorder %s594_s7, %s587_s27 }
  0x40   : > { %p591_p4 = pneg %p590_p2  ;;  %p597_p6 = por %p596_p5, %p595_p11 }
  0x42   : > { %p598_p8 = pnand %p597_p6, %p591_p4 }
  0x44   : > { %601 = shalt.err (!%p598_p8)
}
  0x45   : > { %s676_s14 = smov 32   ;;  %s677_s16 = smov 2  }
  0x46   : > { %501 = dma.hbm_to_vmem [thread:$0]  (!%p765_p12), %s809_s17, 256, %s811_s8, %s140_s28, %s676_s14, %s676_s14, %s677_s16  }
  0x47   : > { %163 = sbr.rel (%p801_p10) target bundleno = 111 (0x6f), region = 28  ;;  %s841_s30 = sand.u32 (!%p801_p10), 1, %s662_s10  }
  0x48   : > { %s474_s4 = sshll.u32 (!%p801_p10), %s841_s30, 7  ;;  %s166_s19 = scalar_lea.sflag (!%p801_p10), [#allocation3], %s841_s30 }
  0x49   : > { %s847_s24 = scalar_lea.vmem (!%p801_p10), [#allocation2], %s474_s4  ;;  %p985_p6 = scmp.ne.s32.totalorder (!%p801_p10), %s980_s20, 0 }
  0x4c   : > { %645 = dma.done.wait (%p985_p6), %s166_s19, 2048  }
  0x4d   : > { %647 = vsyncadd (%p985_p6), %s166_s19, 4294965248  ;;  %s475_s23 = sshll.u32 %s841_s30, 4  ;;  %s175_s3 = scalar_lea.sflag [#allocation6], %s841_s30 }
  0x4e   : > { %s855_s5 = scalar_lea.vmem [#allocation5], %s475_s23 }
  0x4f   : > { %649 = dma.done.wait (%p985_p6), %s175_s3, 256  }
  0x50   : > { %651 = vsyncadd (%p985_p6), %s175_s3, 4294967040  ;;  %v239_v0 = vlaneseq  ;;  %v207_v4 = vld [vmem:[%s847_s24] sm:$0xff]  ;;  %v208_v6 = vld [vmem:[%s847_s24 + $0x8] sm:$0xff]  ;;  %s890_s20 = scalar_lea.vmem [#allocation7], %s474_s4  ;;  %s488_s8 = sshll.u32 %s717_s13, 11 }
  0x51   : > { %v223_v5 = vld [vmem:[%s855_s5] sm:$0x3]  ;;  %v224_v10 = vld [vmem:[%s855_s5 + $0x2] sm:$0x3]  ;;  %v210_v11 = vld [vmem:[%s847_s24 + $0x18] sm:$0xff]  ;;  %s366_s17 = sshll.u32 %s890_s20, 4  ;;  %s924_s25 = scalar_lea.hbm %s976_s2, %s488_s8  ;;  %s926_s17 = int_to_ptr.vmem [resolvable:$true] %s366_s17 }
  0x52   : > { %v240_v1 = vshrl.u32 %v239_v0, 7  ;;  %v209_v9 = vld [vmem:[%s847_s24 + $0x10] sm:$0xff]  ;;  %v211_v14 = vld [vmem:[%s847_s24 + $0x20] sm:$0xff]  ;;  %v212_v16 = vld [vmem:[%s847_s24 + $0x28] sm:$0xff]  ;;  %s352_s26 = scalar_lea.sflag [#allocation4], %s841_s30  ;;  %s602_s27 = scalar_lea.vmem %s926_s17, 2048 }
  0x53   : > { %v225_v15 = vld [vmem:[%s855_s5 + $0x4] sm:$0x3]  ;;  %v226_v22 = vld [vmem:[%s855_s5 + $0x6] sm:$0x3]  ;;  %v214_v23 = vld [vmem:[%s847_s24 + $0x38] sm:$0xff]  ;;  %p603_p12 = scmp.ne.s32.totalorder %s926_s17, %s602_s27  ;;  %p986_p0 = scmp.ne.s32.totalorder %s981_s21, 0 }
  0x54   : > { %v861_v2 = vsub.s32 0, %v240_v1  ;;  %v863_v3 = vsub.s32 1, %v240_v1  ;;  %v213_v21 = vld [vmem:[%s847_s24 + $0x30] sm:$0xff]  ;;  %v215_v28 = vld [vmem:[%s847_s24 + $0x40] sm:$0xff]  ;;  %v227_v29 = vld [vmem:[%s855_s5 + $0x8] sm:$0x3] }
  0x55   : > { %v216_v30 = vld [vmem:[%s847_s24 + $0x48] sm:$0xff]  ;;  %v217_v35 = vld [vmem:[%s847_s24 + $0x50] sm:$0xff]  ;;  %v218_v37 = vld [vmem:[%s847_s24 + $0x58] sm:$0xff]  ;;  %p604_p10 = pnand %p603_p12, %p986_p0  ;;  %s678_s29 = smov [#allocation7]  }
  0x56   : > { %v242_v7 = vrot.slane %v223_v5, %v861_v2  ;;  %v246_v8 = vrot.slane %v223_v5, %v863_v3  ;;  %v250_v12 = vrot.slane %v224_v10, %v861_v2  ;;  %v254_v13 = vrot.slane %v224_v10, %v863_v3  ;;  %v228_v36 = vld [vmem:[%s855_s5 + $0xa] sm:$0x3]  ;;  %v219_v42 = vld [vmem:[%s847_s24 + $0x60] sm:$0xff]  ;;  %v229_v43 = vld [vmem:[%s855_s5 + $0xc] sm:$0x3]  ;;  %s606_s6 = sshll.u32 %s678_s29, 4  ;;  %s607_s6 = int_to_ptr.vmem [resolvable:$false] %s606_s6 }
  0x57   : > { %v258_v19 = vrot.slane %v225_v15, %v861_v2  ;;  %v262_v20 = vrot.slane %v225_v15, %v863_v3  ;;  %v266_v26 = vrot.slane %v226_v22, %v861_v2  ;;  %v270_v27 = vrot.slane %v226_v22, %v863_v3  ;;  %v220_v44 = vld [vmem:[%s847_s24 + $0x68] sm:$0xff]  ;;  %v221_v49 = vld [vmem:[%s847_s24 + $0x70] sm:$0xff]  ;;  %v222_v51 = vld [vmem:[%s847_s24 + $0x78] sm:$0xff]  ;;  %p605_p7 = pneg %p604_p10  ;;  %s608_s7 = scalar_lea.vmem %s607_s6, 4096 }
  0x58   : > { %v319_v17 = vadd.f32 %v242_v7, %v207_v4  ;;  %v320_v18 = vadd.f32 %v246_v8, %v208_v6  ;;  %v321_v24 = vadd.f32 %v250_v12, %v209_v9  ;;  %v322_v25 = vadd.f32 %v254_v13, %v210_v11  ;;  %v230_v50 = vld [vmem:[%s855_s5 + $0xe] sm:$0x3]  ;;  %p609_p9 = scmp.lt.s32.totalorder %s926_s17, %s607_s6  ;;  %p610_p13 = scmp.lt.s32.totalorder %s608_s7, %s602_s27 }
  0x59   : > { %v323_v31 = vadd.f32 %v258_v19, %v211_v14  ;;  %v324_v32 = vadd.f32 %v262_v20, %v212_v16  ;;  %v274_v33 = vrot.slane %v227_v29, %v861_v2  ;;  %v278_v34 = vrot.slane %v227_v29, %v863_v3 }
  0x5a   : > { %335 = vst [vmem:[%s890_s20] sm:$0xff] %v319_v17  ;;  %336 = vst [vmem:[%s890_s20 + $0x8] sm:$0xff] %v320_v18  ;;  %v325_v38 = vadd.f32 %v266_v26, %v213_v21  ;;  %v326_v39 = vadd.f32 %v270_v27, %v214_v23  ;;  %v282_v40 = vrot.slane %v228_v36, %v861_v2  ;;  %p611_p1 = por %p610_p13, %p609_p9 }
  0x5b   : > { %337 = vst [vmem:[%s890_s20 + $0x10] sm:$0xff] %v321_v24  ;;  %338 = vst [vmem:[%s890_s20 + $0x18] sm:$0xff] %v322_v25  ;;  %v286_v41 = vrot.slane %v228_v36, %v863_v3  ;;  %v327_v45 = vadd.f32 %v274_v33, %v215_v28  ;;  %v328_v46 = vadd.f32 %v278_v34, %v216_v30 }
  0x5c   : > { %339 = vst [vmem:[%s890_s20 + $0x20] sm:$0xff] %v323_v31  ;;  %340 = vst [vmem:[%s890_s20 + $0x28] sm:$0xff] %v324_v32  ;;  %v290_v47 = vrot.slane %v229_v43, %v861_v2  ;;  %v294_v48 = vrot.slane %v229_v43, %v863_v3  ;;  %v329_v52 = vadd.f32 %v282_v40, %v217_v35  ;;  %p612_p3 = pnand %p611_p1, %p605_p7 }
  0x5d   : > { %341 = vst [vmem:[%s890_s20 + $0x30] sm:$0xff] %v325_v38  ;;  %342 = vst [vmem:[%s890_s20 + $0x38] sm:$0xff] %v326_v39  ;;  %v330_v53 = vadd.f32 %v286_v41, %v218_v37  ;;  %v298_v54 = vrot.slane %v230_v50, %v861_v2  ;;  %v302_v55 = vrot.slane %v230_v50, %v863_v3 }
  0x5e   : > { %343 = vst [vmem:[%s890_s20 + $0x40] sm:$0xff] %v327_v45  ;;  %344 = vst [vmem:[%s890_s20 + $0x48] sm:$0xff] %v328_v46  ;;  %v331_v56 = vadd.f32 %v290_v47, %v219_v42  ;;  %v332_v57 = vadd.f32 %v294_v48, %v220_v44 }
  0x5f   : > { %345 = vst [vmem:[%s890_s20 + $0x50] sm:$0xff] %v329_v52  ;;  %346 = vst [vmem:[%s890_s20 + $0x58] sm:$0xff] %v330_v53  ;;  %v333_v58 = vadd.f32 %v298_v54, %v221_v49  ;;  %v334_v59 = vadd.f32 %v302_v55, %v222_v51 }
  0x60   : > { %347 = vst [vmem:[%s890_s20 + $0x60] sm:$0xff] %v331_v56  ;;  %348 = vst [vmem:[%s890_s20 + $0x68] sm:$0xff] %v332_v57 }
  0x61   : > { %349 = vst [vmem:[%s890_s20 + $0x70] sm:$0xff] %v333_v58  ;;  %350 = vst [vmem:[%s890_s20 + $0x78] sm:$0xff] %v334_v59 }
  0x62   : > { %615 = shalt.err (!%p612_p3)
}
  0x63   : > { %s616_s14 = scalar_lea.hbm %s924_s25, 2048  ;;  %s620_s19 = scalar_lea.hbm %s976_s2, 8192 }
  0x64   : > { %p617_p2 = scmp.ne.s32.totalorder %s924_s25, %s616_s14  ;;  %p621_p5 = scmp.lt.s32.totalorder %s924_s25, %s976_s2 }
  0x65   : > { %p622_p8 = scmp.lt.s32.totalorder %s620_s19, %s616_s14 }
  0x66   : > { %p618_p4 = pnand %p617_p2, %p986_p0 }
  0x67   : > { %p623_p6 = por %p622_p8, %p621_p5 }
  0x68   : > { %p619_p11 = pneg %p618_p4 }
  0x6a   : > { %p624_p12 = pnand %p623_p6, %p619_p11 }
  0x6c   : > { %627 = shalt.err (!%p624_p12)
}
  0x6d   : > { %s679_s3 = smov 256   ;;  %s680_s5 = smov 16  }
  0x6e   : > { %493 = dma.vmem_to_hbm [thread:$0]  (%p986_p0), %s926_s17, 2048, %s924_s25, %s352_s26, %s679_s3, %s679_s3, %s680_s5  }
  0x6f PF: > { %p507_p10 = scmp.ge.s32.totalorder %s670_s12, 2  ;;  %s381_s20 = sand.u32 1, %s658_s9  }
  0x70   : > { %p987_p7 = scmp.ne.s32.totalorder %s982_s22, 0  ;;  %s382_s8 = scalar_lea.sflag [#allocation4], %s381_s20 }
  0x72   : > { %p503_p9 = pnand %p507_p10, %p987_p7 }
  0x74   : > { %p504_p13 = pneg %p503_p9 }
  0x76   : > { %653 = dma.done.wait (%p504_p13), %s382_s8, 2048  }
  0x77   : > { %655 = vsyncadd (%p504_p13), %s382_s8, 4294965248  ;;  %p18_p1 = scmp.ge.s32.totalorder %s721_s15, 6   ;;  %s988_s9 = smov %s662_s10 }
  0x78   : > { %s989_s10 = smov %s666_s11  ;;  %s990_s11 = smov %s733_s18 }
  0x79   : > { %s991_s12 = smov %s721_s15  ;;  %20 = sbr.rel (!%p18_p1) target bundleno = 7 (0x7), region = 86 }
  0x7e   :  { %387 = vsyncpa [#allocation3], 1 }
  0x7f   :  { %389 = vsyncpa [#allocation3 + $0x1], 1 }
  0x80   :  { %390 = vsyncpa [#allocation6], 1 }
  0x81   :  { %392 = vsyncpa [#allocation6 + $0x1], 1 }
  0x82   :  { %393 = vsyncpa [#allocation4], 1 }
  0x83   :  { %395 = vsyncpa [#allocation4 + $0x1], 1 }

</bundles_post_ra>
